<compile_context>
chip_gen: v6e
topology: v6e:2x2x1
jax: 0.10.0
libtpu: 0.0.40
codegen_flags: <defaults>
</compile_context>

<pallas_src>
import functools

import jax
import jax.numpy as jnp
from jax import lax
from jax.experimental import pallas as pl
from jax.experimental.pallas import tpu as pltpu


# ----------------------------------------------------------------------------
# Kernel: fused embed+input-projection prologue + serial LSTM recurrence
# ----------------------------------------------------------------------------
def _lstm_encoder_kernel(tok_ref, wx_ref, w_hh_ref, b_ref,
                         h_out_ref, c_out_ref,
                         gx_scr,
                         *, seq_len, batch, hidden, vocab, unroll):
    # tok_ref:  (T*Bp, 1)   int32  rows [t*Bp:(t+1)*Bp] = batch at step t
    # wx_ref:   (V, 4H)     bf16   fused Emb @ W_ih^T, gate order i,f,g,o
    # w_hh_ref: (H, 4H)     bf16   fused recurrent weight (gate-concat lanes)
    # b_ref:    (1, 4H)     f32    bias_ih + bias_hh
    # gx_scr:   (T*Bp, 4H)  f32    precomputed input-side gate pre-activations
    H = hidden

    # ---- prologue: embedding gather + input projection as ONE matmul -------
    tok = tok_ref[...]                                           # (T*Bp, 1)
    vocab_iota = lax.broadcasted_iota(jnp.int32, (seq_len * batch, vocab), 1)
    one_hot = jnp.where(tok == vocab_iota, 1.0, 0.0).astype(jnp.bfloat16)
    gx_scr[...] = (jnp.dot(one_hot, wx_ref[...],
                           preferred_element_type=jnp.float32)
                   + b_ref[...])                                 # (T*Bp, 4H)

    # ---- serial recurrence: one fused matmul + 3 EUP pushes per step -------
    w_hh = w_hh_ref[...]              # hoisted loop-invariant (H, 4H) bf16

    def step(t, carry):
        h, c = carry
        row = pl.multiple_of(t * batch, batch)
        gates = gx_scr[pl.ds(row, batch), :] + jnp.dot(
            h.astype(jnp.bfloat16), w_hh,
            preferred_element_type=jnp.float32)                  # (Bp, 4H)
        sg = jax.nn.sigmoid(gates)    # one full-width EUP push
        th = jnp.tanh(gates)          # one full-width EUP push
        i = sg[:, 0 * H:1 * H]
        f = sg[:, 1 * H:2 * H]
        g = th[:, 2 * H:3 * H]
        o = sg[:, 3 * H:4 * H]
        c_new = f * c + i * g                     # f32 elementwise (v5e-safe)
        h_new = o * jnp.tanh(c_new)               # third EUP push
        return h_new, c_new

    h0 = jnp.zeros((batch, hidden), jnp.float32)
    c0 = jnp.zeros((batch, hidden), jnp.float32)
    h_fin, c_fin = lax.fori_loop(0, seq_len, step, (h0, c0), unroll=unroll)

    h_out_ref[...] = h_fin
    c_out_ref[...] = c_fin


# ----------------------------------------------------------------------------
# Wrapper
# ----------------------------------------------------------------------------
def language_encoder_forward(description, params):
    """description: (B, T) int32 token ids.

    Returns (h_n, c_n), each (1, B, encoding_size) — matches
    nn.LSTM(..., batch_first=True)(embedded)[1].
    """
    B, T = description.shape
    emb_tbl = params["embedding"]                  # (V, E)
    w_ih = params["weight_ih"]                     # (4H, E)  PyTorch layout
    w_hh = params["weight_hh"]                     # (4H, H)
    bias = params["bias_ih"] + params["bias_hh"]   # (4H,)    fused bias
    V, E = emb_tbl.shape
    H = w_hh.shape[1]

    # Pad batch to a sublane multiple; padded rows use token 0 and are dropped.
    Bp = ((B + 7) // 8) * 8
    tok = jnp.transpose(description, (1, 0)).astype(jnp.int32)   # (T, B)
    tok = jnp.pad(tok, ((0, 0), (0, Bp - B)))                    # (T, Bp)
    tok_flat = tok.reshape(T * Bp, 1)

    # Fused embedding + input-projection weight (computed once, tiny): (V, 4H).
    wx = jnp.dot(emb_tbl.astype(jnp.float32),
                 w_ih.T.astype(jnp.float32)).astype(jnp.bfloat16)
    # Fused recurrent weight, gate-concat along the lane axis: (H, 4H).
    w_hh_f = w_hh.T.astype(jnp.bfloat16)
    b_f = bias.reshape(1, 4 * H).astype(jnp.float32)

    # Full unroll only for short sequences; partial unroll otherwise.
    unroll = T if T <= 16 else 4

    def vmem():
        return pl.BlockSpec(memory_space=pltpu.MemorySpace.VMEM)

    h_pad, c_pad = pl.pallas_call(
        functools.partial(_lstm_encoder_kernel, seq_len=T, batch=Bp,
                          hidden=H, vocab=V, unroll=unroll),
        out_shape=(jax.ShapeDtypeStruct((Bp, H), jnp.float32),
                   jax.ShapeDtypeStruct((Bp, H), jnp.float32)),
        in_specs=[vmem(), vmem(), vmem(), vmem()],
        out_specs=(vmem(), vmem()),
        scratch_shapes=[pltpu.VMEM((T * Bp, 4 * H), jnp.float32)],
        compiler_params=pltpu.CompilerParams(
            vmem_limit_bytes=32 * 1024 * 1024),
    )(tok_flat, wx, w_hh_f, b_f)

    # Un-pad and add the (num_layers * num_directions = 1) leading axis.
    h_n = h_pad[:B][None, :, :]
    c_n = c_pad[:B][None, :, :]
    return h_n, c_n


# ----------------------------------------------------------------------------
# Pure-JAX reference (same math, f32) for correctness check
# ----------------------------------------------------------------------------
def _reference_forward(description, params):
    emb = params["embedding"][description]        # (B, T, E)
    w_ih_t = params["weight_ih"].T                # (E, 4H)
    w_hh_t = params["weight_hh"].T                # (H, 4H)
    b = params["bias_ih"] + params["bias_hh"]     # (4H,)
    H = params["weight_hh"].shape[1]
    B, T, _ = emb.shape
    h = jnp.zeros((B, H), jnp.float32)
    c = jnp.zeros((B, H), jnp.float32)
    for t in range(T):
        gates = emb[:, t, :] @ w_ih_t + h @ w_hh_t + b
        i = jax.nn.sigmoid(gates[:, 0 * H:1 * H])
        f = jax.nn.sigmoid(gates[:, 1 * H:2 * H])
        g = jnp.tanh(gates[:, 2 * H:3 * H])
        o = jax.nn.sigmoid(gates[:, 3 * H:4 * H])
        c = f * c + i * g
        h = o * jnp.tanh(c)
    return h[None, :, :], c[None, :, :]


if __name__ == "__main__":
    B, T = 2, 8          # batch, description length
    vocab = 16           # vocab_size
    E = 8                # embedding_size
    H = 32               # encoding_size

    key = jax.random.PRNGKey(0)
    ks = jax.random.split(key, 6)
    s = 0.1
    params = {
        "embedding": s * jax.random.normal(ks[0], (vocab, E), jnp.float32),
        "weight_ih": s * jax.random.normal(ks[1], (4 * H, E), jnp.float32),
        "weight_hh": s * jax.random.normal(ks[2], (4 * H, H), jnp.float32),
        "bias_ih":   s * jax.random.normal(ks[3], (4 * H,), jnp.float32),
        "bias_hh":   s * jax.random.normal(ks[4], (4 * H,), jnp.float32),
    }
    description = jax.random.randint(ks[5], (B, T), 0, vocab, dtype=jnp.int32)

    h_n, c_n = jax.block_until_ready(language_encoder_forward(description, params))
    assert h_n.shape == (1, B, H), h_n.shape
    assert c_n.shape == (1, B, H), c_n.shape

    h_ref, c_ref = jax.block_until_ready(_reference_forward(description, params))
    assert jnp.all(jnp.isfinite(h_n)) and jnp.all(jnp.isfinite(c_n))
    assert jnp.allclose(h_n, h_ref, atol=2e-2, rtol=2e-2), float(
        jnp.max(jnp.abs(h_n - h_ref)))
    assert jnp.allclose(c_n, c_ref, atol=2e-2, rtol=2e-2), float(
        jnp.max(jnp.abs(c_n - c_ref)))

    print("KERNEL_OK")
</pallas_src>

<mosaic_0001>
module attributes {stable_mosaic.version = 11 : i64} {
  func.func @_lstm_encoder_kernel(%arg0: memref<64x1xi32, #tpu.memory_space<vmem>>, %arg1: memref<16x128xbf16, #tpu.memory_space<vmem>>, %arg2: memref<32x128xbf16, #tpu.memory_space<vmem>>, %arg3: memref<1x128xf32, #tpu.memory_space<vmem>>, %arg4: memref<8x32xf32, #tpu.memory_space<vmem>>, %arg5: memref<8x32xf32, #tpu.memory_space<vmem>>, %arg6: memref<64x128xf32, #tpu.memory_space<vmem>>) attributes {dimension_semantics = [], scalar_prefetch = 0 : i64, scratch_operands = 1 : i64, tpu.core_type = #tpu.core_type<tc>} {
    %c0 = arith.constant 0 : index
    %c0_0 = arith.constant 0 : index
    %0 = vector.load %arg0[%c0, %c0_0] : memref<64x1xi32, #tpu.memory_space<vmem>>, vector<64x1xi32>
    %1 = tpu.iota {dimensions = array<i32: 1>} : vector<64x16xi32>
    %2 = vector.broadcast %0 : vector<64x1xi32> to vector<64x16xi32>
    %3 = arith.cmpi eq, %2, %1 : vector<64x16xi32>
    %cst = arith.constant 1.000000e+00 : f32
    %cst_1 = arith.constant 0.000000e+00 : f32
    %4 = vector.broadcast %cst : f32 to vector<64x16xf32>
    %5 = vector.broadcast %cst_1 : f32 to vector<64x16xf32>
    %6 = arith.select %3, %4, %5 : vector<64x16xi1>, vector<64x16xf32>
    %7 = arith.truncf %6 : vector<64x16xf32> to vector<64x16xbf16>
    %c0_2 = arith.constant 0 : index
    %c0_3 = arith.constant 0 : index
    %8 = vector.load %arg1[%c0_2, %c0_3] : memref<16x128xbf16, #tpu.memory_space<vmem>>, vector<16x128xbf16>
    %cst_4 = arith.constant dense<0.000000e+00> : vector<64x128xf32>
    %9 = tpu.matmul %7, %8, %cst_4 {dimension_numbers = #tpu.dot_dimension_numbers<[1], [0], [0], [1], [0, 0, 1, 1], [], []>} : vector<64x16xbf16>, vector<16x128xbf16>, vector<64x128xf32> -> vector<64x128xf32>
    %c0_5 = arith.constant 0 : index
    %c0_6 = arith.constant 0 : index
    %10 = vector.load %arg3[%c0_5, %c0_6] : memref<1x128xf32, #tpu.memory_space<vmem>>, vector<1x128xf32>
    %11 = vector.broadcast %10 : vector<1x128xf32> to vector<64x128xf32>
    %12 = arith.addf %9, %11 : vector<64x128xf32>
    %c0_7 = arith.constant 0 : index
    %c0_8 = arith.constant 0 : index
    %13 = vector.load %arg6[%c0_7, %c0_8] : memref<64x128xf32, #tpu.memory_space<vmem>>, vector<64x128xf32>
    tpu.vector_store %arg6[%c0_7, %c0_8], %12 {strides = array<i32>} : memref<64x128xf32, #tpu.memory_space<vmem>>, vector<64x128xf32>,
    %c0_9 = arith.constant 0 : index
    %c0_10 = arith.constant 0 : index
    %14 = vector.load %arg2[%c0_9, %c0_10] : memref<32x128xbf16, #tpu.memory_space<vmem>>, vector<32x128xbf16>
    %cst_11 = arith.constant 0.000000e+00 : f32
    %15 = vector.broadcast %cst_11 : f32 to vector<8x32xf32>
    %cst_12 = arith.constant 0.000000e+00 : f32
    %16 = vector.broadcast %cst_12 : f32 to vector<8x32xf32>
    %c0_i32 = arith.constant 0 : i32
    %c8_i32 = arith.constant 8 : i32
    %17 = arith.muli %c0_i32, %c8_i32 : i32
    %18 = tpu.assume_multiple %17, 8 : i32
    %19 = arith.index_cast %18 : i32 to index
    %c0_13 = arith.constant 0 : index
    %20 = vector.load %arg6[%19, %c0_13] : memref<64x128xf32, #tpu.memory_space<vmem>>, vector<8x128xf32>
    %21 = arith.truncf %15 : vector<8x32xf32> to vector<8x32xbf16>
    %cst_14 = arith.constant dense<0.000000e+00> : vector<8x128xf32>
    %22 = tpu.matmul %21, %14, %cst_14 {dimension_numbers = #tpu.dot_dimension_numbers<[1], [0], [0], [1], [0, 0, 1, 1], [], []>} : vector<8x32xbf16>, vector<32x128xbf16>, vector<8x128xf32> -> vector<8x128xf32>
    %23 = arith.addf %20, %22 : vector<8x128xf32>
    %24 = arith.negf %23 : vector<8x128xf32>
    %25 = math.exp %24 : vector<8x128xf32>
    %cst_15 = arith.constant 1.000000e+00 : f32
    %26 = vector.broadcast %cst_15 : f32 to vector<8x128xf32>
    %27 = arith.addf %26, %25 : vector<8x128xf32>
    %28 = arith.divf %26, %27 : vector<8x128xf32>
    %29 = math.tanh %23 : vector<8x128xf32>
    %30 = vector.extract_strided_slice %28 {offsets = [0, 0], sizes = [8, 32], strides = [1, 1]} : vector<8x128xf32> to vector<8x32xf32>
    %31 = vector.extract_strided_slice %28 {offsets = [0, 32], sizes = [8, 32], strides = [1, 1]} : vector<8x128xf32> to vector<8x32xf32>
    %32 = vector.extract_strided_slice %29 {offsets = [0, 64], sizes = [8, 32], strides = [1, 1]} : vector<8x128xf32> to vector<8x32xf32>
    %33 = vector.extract_strided_slice %28 {offsets = [0, 96], sizes = [8, 32], strides = [1, 1]} : vector<8x128xf32> to vector<8x32xf32>
    %34 = arith.mulf %31, %16 : vector<8x32xf32>
    %35 = arith.mulf %30, %32 : vector<8x32xf32>
    %36 = arith.addf %34, %35 : vector<8x32xf32>
    %37 = math.tanh %36 : vector<8x32xf32>
    %38 = arith.mulf %33, %37 : vector<8x32xf32>
    %c1_i32 = arith.constant 1 : i32
    %c8_i32_16 = arith.constant 8 : i32
    %39 = arith.muli %c1_i32, %c8_i32_16 : i32
    %40 = tpu.assume_multiple %39, 8 : i32
    %41 = arith.index_cast %40 : i32 to index
    %c0_17 = arith.constant 0 : index
    %42 = vector.load %arg6[%41, %c0_17] : memref<64x128xf32, #tpu.memory_space<vmem>>, vector<8x128xf32>
    %43 = arith.truncf %38 : vector<8x32xf32> to vector<8x32xbf16>
    %cst_18 = arith.constant dense<0.000000e+00> : vector<8x128xf32>
    %44 = tpu.matmul %43, %14, %cst_18 {dimension_numbers = #tpu.dot_dimension_numbers<[1], [0], [0], [1], [0, 0, 1, 1], [], []>} : vector<8x32xbf16>, vector<32x128xbf16>, vector<8x128xf32> -> vector<8x128xf32>
    %45 = arith.addf %42, %44 : vector<8x128xf32>
    %46 = arith.negf %45 : vector<8x128xf32>
    %47 = math.exp %46 : vector<8x128xf32>
    %cst_19 = arith.constant 1.000000e+00 : f32
    %48 = vector.broadcast %cst_19 : f32 to vector<8x128xf32>
    %49 = arith.addf %48, %47 : vector<8x128xf32>
    %50 = arith.divf %48, %49 : vector<8x128xf32>
    %51 = math.tanh %45 : vector<8x128xf32>
    %52 = vector.extract_strided_slice %50 {offsets = [0, 0], sizes = [8, 32], strides = [1, 1]} : vector<8x128xf32> to vector<8x32xf32>
    %53 = vector.extract_strided_slice %50 {offsets = [0, 32], sizes = [8, 32], strides = [1, 1]} : vector<8x128xf32> to vector<8x32xf32>
    %54 = vector.extract_strided_slice %51 {offsets = [0, 64], sizes = [8, 32], strides = [1, 1]} : vector<8x128xf32> to vector<8x32xf32>
    %55 = vector.extract_strided_slice %50 {offsets = [0, 96], sizes = [8, 32], strides = [1, 1]} : vector<8x128xf32> to vector<8x32xf32>
    %56 = arith.mulf %53, %36 : vector<8x32xf32>
    %57 = arith.mulf %52, %54 : vector<8x32xf32>
    %58 = arith.addf %56, %57 : vector<8x32xf32>
    %59 = math.tanh %58 : vector<8x32xf32>
    %60 = arith.mulf %55, %59 : vector<8x32xf32>
    %c2_i32 = arith.constant 2 : i32
    %c8_i32_20 = arith.constant 8 : i32
    %61 = arith.muli %c2_i32, %c8_i32_20 : i32
    %62 = tpu.assume_multiple %61, 8 : i32
    %63 = arith.index_cast %62 : i32 to index
    %c0_21 = arith.constant 0 : index
    %64 = vector.load %arg6[%63, %c0_21] : memref<64x128xf32, #tpu.memory_space<vmem>>, vector<8x128xf32>
    %65 = arith.truncf %60 : vector<8x32xf32> to vector<8x32xbf16>
    %cst_22 = arith.constant dense<0.000000e+00> : vector<8x128xf32>
    %66 = tpu.matmul %65, %14, %cst_22 {dimension_numbers = #tpu.dot_dimension_numbers<[1], [0], [0], [1], [0, 0, 1, 1], [], []>} : vector<8x32xbf16>, vector<32x128xbf16>, vector<8x128xf32> -> vector<8x128xf32>
    %67 = arith.addf %64, %66 : vector<8x128xf32>
    %68 = arith.negf %67 : vector<8x128xf32>
    %69 = math.exp %68 : vector<8x128xf32>
    %cst_23 = arith.constant 1.000000e+00 : f32
    %70 = vector.broadcast %cst_23 : f32 to vector<8x128xf32>
    %71 = arith.addf %70, %69 : vector<8x128xf32>
    %72 = arith.divf %70, %71 : vector<8x128xf32>
    %73 = math.tanh %67 : vector<8x128xf32>
    %74 = vector.extract_strided_slice %72 {offsets = [0, 0], sizes = [8, 32], strides = [1, 1]} : vector<8x128xf32> to vector<8x32xf32>
    %75 = vector.extract_strided_slice %72 {offsets = [0, 32], sizes = [8, 32], strides = [1, 1]} : vector<8x128xf32> to vector<8x32xf32>
    %76 = vector.extract_strided_slice %73 {offsets = [0, 64], sizes = [8, 32], strides = [1, 1]} : vector<8x128xf32> to vector<8x32xf32>
    %77 = vector.extract_strided_slice %72 {offsets = [0, 96], sizes = [8, 32], strides = [1, 1]} : vector<8x128xf32> to vector<8x32xf32>
    %78 = arith.mulf %75, %58 : vector<8x32xf32>
    %79 = arith.mulf %74, %76 : vector<8x32xf32>
    %80 = arith.addf %78, %79 : vector<8x32xf32>
    %81 = math.tanh %80 : vector<8x32xf32>
    %82 = arith.mulf %77, %81 : vector<8x32xf32>
    %c3_i32 = arith.constant 3 : i32
    %c8_i32_24 = arith.constant 8 : i32
    %83 = arith.muli %c3_i32, %c8_i32_24 : i32
    %84 = tpu.assume_multiple %83, 8 : i32
    %85 = arith.index_cast %84 : i32 to index
    %c0_25 = arith.constant 0 : index
    %86 = vector.load %arg6[%85, %c0_25] : memref<64x128xf32, #tpu.memory_space<vmem>>, vector<8x128xf32>
    %87 = arith.truncf %82 : vector<8x32xf32> to vector<8x32xbf16>
    %cst_26 = arith.constant dense<0.000000e+00> : vector<8x128xf32>
    %88 = tpu.matmul %87, %14, %cst_26 {dimension_numbers = #tpu.dot_dimension_numbers<[1], [0], [0], [1], [0, 0, 1, 1], [], []>} : vector<8x32xbf16>, vector<32x128xbf16>, vector<8x128xf32> -> vector<8x128xf32>
    %89 = arith.addf %86, %88 : vector<8x128xf32>
    %90 = arith.negf %89 : vector<8x128xf32>
    %91 = math.exp %90 : vector<8x128xf32>
    %cst_27 = arith.constant 1.000000e+00 : f32
    %92 = vector.broadcast %cst_27 : f32 to vector<8x128xf32>
    %93 = arith.addf %92, %91 : vector<8x128xf32>
    %94 = arith.divf %92, %93 : vector<8x128xf32>
    %95 = math.tanh %89 : vector<8x128xf32>
    %96 = vector.extract_strided_slice %94 {offsets = [0, 0], sizes = [8, 32], strides = [1, 1]} : vector<8x128xf32> to vector<8x32xf32>
    %97 = vector.extract_strided_slice %94 {offsets = [0, 32], sizes = [8, 32], strides = [1, 1]} : vector<8x128xf32> to vector<8x32xf32>
    %98 = vector.extract_strided_slice %95 {offsets = [0, 64], sizes = [8, 32], strides = [1, 1]} : vector<8x128xf32> to vector<8x32xf32>
    %99 = vector.extract_strided_slice %94 {offsets = [0, 96], sizes = [8, 32], strides = [1, 1]} : vector<8x128xf32> to vector<8x32xf32>
    %100 = arith.mulf %97, %80 : vector<8x32xf32>
    %101 = arith.mulf %96, %98 : vector<8x32xf32>
    %102 = arith.addf %100, %101 : vector<8x32xf32>
    %103 = math.tanh %102 : vector<8x32xf32>
    %104 = arith.mulf %99, %103 : vector<8x32xf32>
    %c4_i32 = arith.constant 4 : i32
    %c8_i32_28 = arith.constant 8 : i32
    %105 = arith.muli %c4_i32, %c8_i32_28 : i32
    %106 = tpu.assume_multiple %105, 8 : i32
    %107 = arith.index_cast %106 : i32 to index
    %c0_29 = arith.constant 0 : index
    %108 = vector.load %arg6[%107, %c0_29] : memref<64x128xf32, #tpu.memory_space<vmem>>, vector<8x128xf32>
    %109 = arith.truncf %104 : vector<8x32xf32> to vector<8x32xbf16>
    %cst_30 = arith.constant dense<0.000000e+00> : vector<8x128xf32>
    %110 = tpu.matmul %109, %14, %cst_30 {dimension_numbers = #tpu.dot_dimension_numbers<[1], [0], [0], [1], [0, 0, 1, 1], [], []>} : vector<8x32xbf16>, vector<32x128xbf16>, vector<8x128xf32> -> vector<8x128xf32>
    %111 = arith.addf %108, %110 : vector<8x128xf32>
    %112 = arith.negf %111 : vector<8x128xf32>
    %113 = math.exp %112 : vector<8x128xf32>
    %cst_31 = arith.constant 1.000000e+00 : f32
    %114 = vector.broadcast %cst_31 : f32 to vector<8x128xf32>
    %115 = arith.addf %114, %113 : vector<8x128xf32>
    %116 = arith.divf %114, %115 : vector<8x128xf32>
    %117 = math.tanh %111 : vector<8x128xf32>
    %118 = vector.extract_strided_slice %116 {offsets = [0, 0], sizes = [8, 32], strides = [1, 1]} : vector<8x128xf32> to vector<8x32xf32>
    %119 = vector.extract_strided_slice %116 {offsets = [0, 32], sizes = [8, 32], strides = [1, 1]} : vector<8x128xf32> to vector<8x32xf32>
    %120 = vector.extract_strided_slice %117 {offsets = [0, 64], sizes = [8, 32], strides = [1, 1]} : vector<8x128xf32> to vector<8x32xf32>
    %121 = vector.extract_strided_slice %116 {offsets = [0, 96], sizes = [8, 32], strides = [1, 1]} : vector<8x128xf32> to vector<8x32xf32>
    %122 = arith.mulf %119, %102 : vector<8x32xf32>
    %123 = arith.mulf %118, %120 : vector<8x32xf32>
    %124 = arith.addf %122, %123 : vector<8x32xf32>
    %125 = math.tanh %124 : vector<8x32xf32>
    %126 = arith.mulf %121, %125 : vector<8x32xf32>
    %c5_i32 = arith.constant 5 : i32
    %c8_i32_32 = arith.constant 8 : i32
    %127 = arith.muli %c5_i32, %c8_i32_32 : i32
    %128 = tpu.assume_multiple %127, 8 : i32
    %129 = arith.index_cast %128 : i32 to index
    %c0_33 = arith.constant 0 : index
    %130 = vector.load %arg6[%129, %c0_33] : memref<64x128xf32, #tpu.memory_space<vmem>>, vector<8x128xf32>
    %131 = arith.truncf %126 : vector<8x32xf32> to vector<8x32xbf16>
    %cst_34 = arith.constant dense<0.000000e+00> : vector<8x128xf32>
    %132 = tpu.matmul %131, %14, %cst_34 {dimension_numbers = #tpu.dot_dimension_numbers<[1], [0], [0], [1], [0, 0, 1, 1], [], []>} : vector<8x32xbf16>, vector<32x128xbf16>, vector<8x128xf32> -> vector<8x128xf32>
    %133 = arith.addf %130, %132 : vector<8x128xf32>
    %134 = arith.negf %133 : vector<8x128xf32>
    %135 = math.exp %134 : vector<8x128xf32>
    %cst_35 = arith.constant 1.000000e+00 : f32
    %136 = vector.broadcast %cst_35 : f32 to vector<8x128xf32>
    %137 = arith.addf %136, %135 : vector<8x128xf32>
    %138 = arith.divf %136, %137 : vector<8x128xf32>
    %139 = math.tanh %133 : vector<8x128xf32>
    %140 = vector.extract_strided_slice %138 {offsets = [0, 0], sizes = [8, 32], strides = [1, 1]} : vector<8x128xf32> to vector<8x32xf32>
    %141 = vector.extract_strided_slice %138 {offsets = [0, 32], sizes = [8, 32], strides = [1, 1]} : vector<8x128xf32> to vector<8x32xf32>
    %142 = vector.extract_strided_slice %139 {offsets = [0, 64], sizes = [8, 32], strides = [1, 1]} : vector<8x128xf32> to vector<8x32xf32>
    %143 = vector.extract_strided_slice %138 {offsets = [0, 96], sizes = [8, 32], strides = [1, 1]} : vector<8x128xf32> to vector<8x32xf32>
    %144 = arith.mulf %141, %124 : vector<8x32xf32>
    %145 = arith.mulf %140, %142 : vector<8x32xf32>
    %146 = arith.addf %144, %145 : vector<8x32xf32>
    %147 = math.tanh %146 : vector<8x32xf32>
    %148 = arith.mulf %143, %147 : vector<8x32xf32>
    %c6_i32 = arith.constant 6 : i32
    %c8_i32_36 = arith.constant 8 : i32
    %149 = arith.muli %c6_i32, %c8_i32_36 : i32
    %150 = tpu.assume_multiple %149, 8 : i32
    %151 = arith.index_cast %150 : i32 to index
    %c0_37 = arith.constant 0 : index
    %152 = vector.load %arg6[%151, %c0_37] : memref<64x128xf32, #tpu.memory_space<vmem>>, vector<8x128xf32>
    %153 = arith.truncf %148 : vector<8x32xf32> to vector<8x32xbf16>
    %cst_38 = arith.constant dense<0.000000e+00> : vector<8x128xf32>
    %154 = tpu.matmul %153, %14, %cst_38 {dimension_numbers = #tpu.dot_dimension_numbers<[1], [0], [0], [1], [0, 0, 1, 1], [], []>} : vector<8x32xbf16>, vector<32x128xbf16>, vector<8x128xf32> -> vector<8x128xf32>
    %155 = arith.addf %152, %154 : vector<8x128xf32>
    %156 = arith.negf %155 : vector<8x128xf32>
    %157 = math.exp %156 : vector<8x128xf32>
    %cst_39 = arith.constant 1.000000e+00 : f32
    %158 = vector.broadcast %cst_39 : f32 to vector<8x128xf32>
    %159 = arith.addf %158, %157 : vector<8x128xf32>
    %160 = arith.divf %158, %159 : vector<8x128xf32>
    %161 = math.tanh %155 : vector<8x128xf32>
    %162 = vector.extract_strided_slice %160 {offsets = [0, 0], sizes = [8, 32], strides = [1, 1]} : vector<8x128xf32> to vector<8x32xf32>
    %163 = vector.extract_strided_slice %160 {offsets = [0, 32], sizes = [8, 32], strides = [1, 1]} : vector<8x128xf32> to vector<8x32xf32>
    %164 = vector.extract_strided_slice %161 {offsets = [0, 64], sizes = [8, 32], strides = [1, 1]} : vector<8x128xf32> to vector<8x32xf32>
    %165 = vector.extract_strided_slice %160 {offsets = [0, 96], sizes = [8, 32], strides = [1, 1]} : vector<8x128xf32> to vector<8x32xf32>
    %166 = arith.mulf %163, %146 : vector<8x32xf32>
    %167 = arith.mulf %162, %164 : vector<8x32xf32>
    %168 = arith.addf %166, %167 : vector<8x32xf32>
    %169 = math.tanh %168 : vector<8x32xf32>
    %170 = arith.mulf %165, %169 : vector<8x32xf32>
    %c7_i32 = arith.constant 7 : i32
    %c8_i32_40 = arith.constant 8 : i32
    %171 = arith.muli %c7_i32, %c8_i32_40 : i32
    %172 = tpu.assume_multiple %171, 8 : i32
    %173 = arith.index_cast %172 : i32 to index
    %c0_41 = arith.constant 0 : index
    %174 = vector.load %arg6[%173, %c0_41] : memref<64x128xf32, #tpu.memory_space<vmem>>, vector<8x128xf32>
    %175 = arith.truncf %170 : vector<8x32xf32> to vector<8x32xbf16>
    %cst_42 = arith.constant dense<0.000000e+00> : vector<8x128xf32>
    %176 = tpu.matmul %175, %14, %cst_42 {dimension_numbers = #tpu.dot_dimension_numbers<[1], [0], [0], [1], [0, 0, 1, 1], [], []>} : vector<8x32xbf16>, vector<32x128xbf16>, vector<8x128xf32> -> vector<8x128xf32>
    %177 = arith.addf %174, %176 : vector<8x128xf32>
    %178 = arith.negf %177 : vector<8x128xf32>
    %179 = math.exp %178 : vector<8x128xf32>
    %cst_43 = arith.constant 1.000000e+00 : f32
    %180 = vector.broadcast %cst_43 : f32 to vector<8x128xf32>
    %181 = arith.addf %180, %179 : vector<8x128xf32>
    %182 = arith.divf %180, %181 : vector<8x128xf32>
    %183 = math.tanh %177 : vector<8x128xf32>
    %184 = vector.extract_strided_slice %182 {offsets = [0, 0], sizes = [8, 32], strides = [1, 1]} : vector<8x128xf32> to vector<8x32xf32>
    %185 = vector.extract_strided_slice %182 {offsets = [0, 32], sizes = [8, 32], strides = [1, 1]} : vector<8x128xf32> to vector<8x32xf32>
    %186 = vector.extract_strided_slice %183 {offsets = [0, 64], sizes = [8, 32], strides = [1, 1]} : vector<8x128xf32> to vector<8x32xf32>
    %187 = vector.extract_strided_slice %182 {offsets = [0, 96], sizes = [8, 32], strides = [1, 1]} : vector<8x128xf32> to vector<8x32xf32>
    %188 = arith.mulf %185, %168 : vector<8x32xf32>
    %189 = arith.mulf %184, %186 : vector<8x32xf32>
    %190 = arith.addf %188, %189 : vector<8x32xf32>
    %191 = math.tanh %190 : vector<8x32xf32>
    %192 = arith.mulf %187, %191 : vector<8x32xf32>
    %c8_i32_44 = arith.constant 8 : i32
    %c0_45 = arith.constant 0 : index
    %c0_46 = arith.constant 0 : index
    %193 = vector.load %arg4[%c0_45, %c0_46] : memref<8x32xf32, #tpu.memory_space<vmem>>, vector<8x32xf32>
    tpu.vector_store %arg4[%c0_45, %c0_46], %192 {strides = array<i32>} : memref<8x32xf32, #tpu.memory_space<vmem>>, vector<8x32xf32>,
    %c0_47 = arith.constant 0 : index
    %c0_48 = arith.constant 0 : index
    %194 = vector.load %arg5[%c0_47, %c0_48] : memref<8x32xf32, #tpu.memory_space<vmem>>, vector<8x32xf32>
    tpu.vector_store %arg5[%c0_47, %c0_48], %190 {strides = array<i32>} : memref<8x32xf32, #tpu.memory_space<vmem>>, vector<8x32xf32>,
    return
  }
}

</mosaic_0001>

<bundles_post_ra>
// kernel: tpu_custom_call.1
= control target key start
LH: loop header
LB: loop body
LE: loop exit
PB: predicated region body
PF: predicated region fallthrough
CT: control target
= control target key end

     0   :  { %11 = vsyncpa [#allocation4], 0  ;;  %v1066_v2 = vmov 0   ;;  %v1067_v6 = vmov 0.0   ;;  %vm1068_vm0 = vmmov 0   ;;  %s1289_s0 = inlined_call_operand.vmem [shape: s32[64,1], index: 0, kind: input, shape index: {}]   ;;  %s1290_s1 = inlined_call_operand.vmem [shape: bf16[16,128], index: 1, kind: input, shape index: {}]   ;;  %s1291_s2 = inlined_call_operand.vmem [shape: bf16[32,128], index: 2, kind: input, shape index: {}]   ;;  %s1292_s3 = inlined_call_operand.vmem [shape: f32[1,128], index: 3, kind: input, shape index: {}]   ;;  %s1293_s4 = inlined_call_operand.hbm [shape: f32[8,32], index: 4, kind: output, shape index: {0}]   ;;  %s1294_s5 = inlined_call_operand.hbm [shape: f32[8,32], index: 5, kind: output, shape index: {1}]  }
   0x1   :  { %v24_v0 = vld [vmem:[%s1289_s0 + $0x10] sm:$0xff]  ;;  %v22_v1 = vld [vmem:[%s1289_s0] sm:$0xff]  ;;  %954 = vset.pattern.permute.xlu1 %v1066_v2  ;;  %953 = vset.pattern.permute.xlu0 %v1066_v2  ;;  %v25_v3 = vld [vmem:[%s1289_s0 + $0x18] sm:$0xff] }
   0x2   :  { %39 = vperm.xlu1 %954, %v24_v0   ;;  %33 = vperm.xlu0 %953, %v22_v1   ;;  %v1116_v4 = vld [vmem:[%s1291_s2 + $0x8] sm:$0xff]   ;;  %v1126_v7 = vld [vmem:[%s1291_s2] sm:$0xff]  }
   0x3   :  { %v23_v5 = vld [vmem:[%s1289_s0 + $0x8] sm:$0xff]  ;;  %881 = vmatprep.subr.bf16.mxu1 %v1067_v6  ;;  %v957_v8 = vld [vmem:[%s1290_s1] sm:$0xff]   ;;  %885 = vmatprep.mubr.msk.bf16.mxu1 %vm1068_vm0, %v1067_v6 }
   0x4   :  { %882 = vmatpush3.bf16.msra.mxu1 %v1116_v4 }
   0x5   :  { %12 = vsyncpa [#allocation6], 0  ;;  %883 = vmatprep.subr.bf16.mxu1 %v1067_v6  ;;  %871 = vmatprep.subr.bf16.mxu0 %v957_v8  ;;  %v30_v9 = vlaneseq  ;;  %vm91_vm5 = vcmask 130048   ;;  %v1164_v26 = vld [vmem:[%s1292_s3] ss:$0 sm:$0xff]  ;;  %s1069_s7 = smov 64  }
   0x6   :  { %42 = vperm.xlu1 %954, %v25_v3   ;;  %36 = vperm.xlu0 %953, %v23_v5   ;;  %s1070_s8 = smov 32   ;;  %vm194_vm6 = vcmask 261120   ;;  %v26_v60 = vld [vmem:[%s1289_s0 + $0x20] sm:$0xff]  ;;  %v28_v61 = vld [vmem:[%s1289_s0 + $0x30] sm:$0xff]  ;;  %v29_v3 = vld [vmem:[%s1289_s0 + $0x38] sm:$0xff]  ;;  %s1072_s16 = smov [#allocation5]  }
   0x7   :  { %872 = vmatpush3.bf16.msra.mxu0 %v957_v8  ;;  %v1143_v10 = vand.u32 127, %v30_v9  ;;  %s807_s17 = sshll.u32 %s1072_s16, 4  ;;  %s808_s17 = int_to_ptr.vmem [resolvable:$true] %s807_s17 }
   0x8   :  { %884 = vmatpush3.bf16.msra.mxu1 %v1126_v7  ;;  %897 = vmatprep.subr.bf16.mxu0 %v1067_v6  ;;  %s1022_s18 = scalar_lea.vmem %s808_s17, 128  ;;  %p1027_p1 = scmp.lt.s32.totalorder %s808_s17, %s808_s17 }
   0x9   :  { %889 = vmatprep.subr.bf16.mxu1 %v1067_v6  ;;  %p1023_p0 = scmp.ne.s32.totalorder %s808_s17, %s1022_s18  ;;  %p1028_p2 = scmp.lt.s32.totalorder %s1022_s18, %s1022_s18 }
   0xb   :  { %886 = vmatmul.mubr.bf16.vlgmr.msra.gmra.mxu1 %v1066_v2  ;;  %v27_v2 = vld [vmem:[%s1289_s0 + $0x28] sm:$0xff]  ;;  %s1071_s0 = smov 96   ;;  %p1029_p3 = por %p1028_p2, %p1027_p1 }
   0xc   :  { %890 = vmatpush3.bf16.msra.mxu1 %v1116_v4  ;;  %893 = vmatprep.mubr.msk.bf16.mxu1 %vm1068_vm0, %v1067_v6 }
   0xd   :  { %891 = vmatprep.subr.bf16.mxu1 %v1067_v6  ;;  %p1030_p4 = pnand %p1029_p3, %p1023_p0 }
  0x10   :  { %892 = vmatpush3.bf16.msra.mxu1 %v1126_v7 }
  0x11   :  { %905 = vmatprep.subr.bf16.mxu1 %v1067_v6 }
  0x7d   :  { %v40_v11 = vpop.permute.xlu1 %39  ;;  %v34_v12 = vpop.permute.xlu0 %33 }
  0x7e   :  { %vm58_vm1 = vcmp.eq.s32.totalorder %v40_v11, %v1143_v10  ;;  %vm56_vm2 = vcmp.eq.s32.totalorder %v34_v12, %v1143_v10 }
  0x7f   :  { %v66_v15 = vsel %vm58_vm1, 1.0, %v1067_v6  ;;  %v64_v16 = vsel %vm56_vm2, 1.0, %v1067_v6 }
  0x81   :  { %v43_v13 = vpop.permute.xlu1 %42  ;;  %v37_v14 = vpop.permute.xlu0 %36 }
  0x82   :  { %vm59_vm3 = vcmp.eq.s32.totalorder %v43_v13, %v1143_v10  ;;  %vm57_vm4 = vcmp.eq.s32.totalorder %v37_v14, %v1143_v10 }
  0x83   :  { %v67_v17 = vsel %vm59_vm3, 1.0, %v1067_v6  ;;  %v65_v18 = vsel %vm57_vm4, 1.0, %v1067_v6 }
  0x84   :  { %v73_v19 = vpack.c.bf16 %v67_v17, %v66_v15  ;;  %v72_v20 = vpack.c.bf16 %v65_v18, %v64_v16 }
  0x86   :  { %873 = vmatprep.mubr.msk.bf16.mxu0 %vm91_vm5, %v72_v20 }
  0x87   :  { %874 = vmatmul.mubr.msk.bf16.vlgmr.msra.gmra.mxu0 %vm91_vm5, %v73_v19 }
  0x88   :  { %898 = vmatpush3.bf16.msra.mxu0 %v1116_v4 }
  0x89   :  { %899 = vmatprep.subr.bf16.mxu0 %v1067_v6 }
  0x8c   :  { %900 = vmatpush3.bf16.msra.mxu0 %v1126_v7 }
  0x8d   :  { %913 = vmatprep.subr.bf16.mxu0 %v1067_v6 }
  0xcb   :  { %v232_v21 = vpop.f32.mrf.mxu1 }
  0xcd   :  { %v887_v22 = vpop.f32.mrf.mxu1 }
  0xcf   :  { %v235_v23 = vpop.f32.mrf.mxu1 }
  0xd1   :  { %v888_v24 = vpop.f32.mrf.mxu1 }
 0x147   :  { %v1159_v25 = vpop.f32.mrf.mxu0 }
 0x149   :  { %v138_v27 = vpop.f32.mrf.mxu0 }
 0x14a   :  { %v139_v28 = vadd.f32 %v1164_v26, %v138_v27  ;;  %v147_v27 = vadd.f32 %v1159_v25, %v1164_v26 }
 0x14b   :  { %v1178_v45 = vpop.f32.mrf.mxu0 }
 0x14c   :  { %v238_v29 = vadd.f32 %v232_v21, %v139_v28 }
 0x14d   :  { %v141_v46 = vpop.f32.mrf.mxu0 }
 0x14e   :  { %958 = vtanh.f32 %v238_v29  ;;  %v827_v31 = vmul.f32 -1.442695, %v238_v29  ;;  %v142_v47 = vadd.f32 %v1164_v26, %v141_v46 }
 0x150   :  { %960 = vpow2.f32 %v827_v31 }
 0x15b   :  { %v959_v30 = vpop.eup %958 }
 0x15c   :  { %248 = vrot.lane.b32.xlu0 %v959_v30, %s1069_s7 }
 0x15d   :  { %v961_v32 = vpop.eup %960 }
 0x15e   :  { %v242_v33 = vadd.f32 1.0, %v961_v32 }
 0x160   :  { %962 = vrcp.f32 %v242_v33 }
 0x16d   :  { %v963_v34 = vpop.eup %962 }
 0x16e   :  { %v246_v37 = vmul.f32 0.0, %v963_v34 }
 0x1ce   :  { %v249_v35 = vpop.permute.xlu0 %248 }
 0x1cf   :  { %v251_v36 = vmul.f32 %v963_v34, %v249_v35 }
 0x1d1   :  { %253 = vrot.lane.b32.xlu1 %v251_v36, %s1070_s8 }
 0x243   :  { %v254_v38 = vpop.permute.xlu1 %253 }
 0x244   :  { %v256_v39 = vadd.f32 %v254_v38, %v246_v37 }
 0x246   :  { %964 = vtanh.f32 %v256_v39 }
 0x253   :  { %v965_v40 = vpop.eup %964 }
 0x254   :  { %259 = vrot.lane.b32.xlu0 %v965_v40, %s1069_s7 }
 0x2c6   :  { %v260_v41 = vpop.permute.xlu0 %259 }
 0x2c7   :  { %v262_v42 = vmul.f32 %v963_v34, %v260_v41 }
 0x2c9   :  { %v265_v43 = vpack.c.bf16 %v262_v42, %v262_v42 }
 0x2cb   :  { %267 = vrot.lane.b32.xlu1 %v265_v43, %s1070_s8 }
 0x33d   :  { %v268_v44 = vpop.permute.xlu1 %267 }
 0x33e   :  { %894 = vmatmul.mubr.msk.bf16.vlgmr.msra.gmra.mxu1 %vm194_vm6, %v268_v44 }
 0x33f   :  { %906 = vmatpush3.bf16.msra.mxu1 %v1116_v4  ;;  %909 = vmatprep.mubr.msk.bf16.mxu1 %vm1068_vm0, %v1067_v6 }
 0x340   :  { %907 = vmatprep.subr.bf16.mxu1 %v1067_v6 }
 0x343   :  { %908 = vmatpush3.bf16.msra.mxu1 %v1126_v7 }
 0x344   :  { %921 = vmatprep.subr.bf16.mxu1 %v1067_v6 }
 0x3fe   :  { %v306_v48 = vpop.f32.mrf.mxu1 }
 0x3ff   :  { %v312_v49 = vadd.f32 %v306_v48, %v142_v47  ;;  %v150_v48 = vadd.f32 %v1178_v45, %v1164_v26 }
 0x400   :  { %v895_v50 = vpop.f32.mrf.mxu1 }
 0x401   :  { %966 = vtanh.f32 %v312_v49  ;;  %v829_v54 = vmul.f32 -1.442695, %v312_v49 }
 0x402   :  { %v309_v51 = vpop.f32.mrf.mxu1 }
 0x403   :  { %968 = vpow2.f32 %v829_v54 }
 0x404   :  { %v896_v52 = vpop.f32.mrf.mxu1 }
 0x40e   :  { %v967_v53 = vpop.eup %966 }
 0x40f   :  { %322 = vrot.lane.b32.xlu0 %v967_v53, %s1069_s7 }
 0x410   :  { %v969_v55 = vpop.eup %968 }
 0x411   :  { %v316_v56 = vadd.f32 1.0, %v969_v55 }
 0x413   :  { %970 = vrcp.f32 %v316_v56 }
 0x420   :  { %v971_v57 = vpop.eup %970 }
 0x421   :  { %v320_v62 = vmul.f32 %v971_v57, %v256_v39 }
 0x481   :  { %v323_v58 = vpop.permute.xlu0 %322 }
 0x482   :  { %v325_v59 = vmul.f32 %v971_v57, %v323_v58 }
 0x484   :  { %327 = vrot.lane.b32.xlu1 %v325_v59, %s1070_s8 }
 0x488   :  { %45 = vperm.xlu1 %954, %v26_v60  }
 0x48c   :  { %51 = vperm.xlu1 %954, %v28_v61  }
 0x4f6   :  { %v328_v63 = vpop.permute.xlu1 %327 }
 0x4f7   :  { %v330_v0 = vadd.f32 %v328_v63, %v320_v62 }
 0x4f9   :  { %972 = vtanh.f32 %v330_v0 }
 0x503   :  { %v46_v11 = vpop.permute.xlu1 %45 }
 0x504   :  { %vm60_vm7 = vcmp.eq.s32.totalorder %v46_v11, %v1143_v10 }
 0x505   :  { %v68_v14 = vsel %vm60_vm7, 1.0, %v1067_v6 }
 0x506   :  { %v973_v1 = vpop.eup %972 }
 0x507   :  { %333 = vrot.lane.b32.xlu0 %v973_v1, %s1069_s7  ;;  %v52_v12 = vpop.permute.xlu1 %51 }
 0x508   :  { %vm62_vm9 = vcmp.eq.s32.totalorder %v52_v12, %v1143_v10 }
 0x509   :  { %v70_v18 = vsel %vm62_vm9, 1.0, %v1067_v6 }
 0x50b   :  { %48 = vperm.xlu0 %953, %v27_v2  }
 0x50f   :  { %54 = vperm.xlu0 %953, %v29_v3  }
 0x579   :  { %v334_v5 = vpop.permute.xlu0 %333 }
 0x57a   :  { %v336_v8 = vmul.f32 %v971_v57, %v334_v5 }
 0x57c   :  { %v339_v9 = vpack.c.bf16 %v336_v8, %v336_v8 }
 0x57e   :  { %341 = vrot.lane.b32.xlu1 %v339_v9, %s1070_s8 }
 0x586   :  { %v49_v13 = vpop.permute.xlu0 %48 }
 0x587   :  { %vm61_vm8 = vcmp.eq.s32.totalorder %v49_v13, %v1143_v10 }
 0x588   :  { %v69_v15 = vsel %vm61_vm8, 1.0, %v1067_v6 }
 0x589   :  { %v74_v16 = vpack.c.bf16 %v69_v15, %v68_v14 }
 0x58a   :  { %v55_v17 = vpop.permute.xlu0 %54 }
 0x58b   :  { %vm63_vm10 = vcmp.eq.s32.totalorder %v55_v17, %v1143_v10  ;;  %877 = vmatprep.mubr.msk.bf16.mxu0 %vm91_vm5, %v74_v16 }
 0x58c   :  { %v71_v19 = vsel %vm63_vm10, 1.0, %v1067_v6 }
 0x58d   :  { %v75_v20 = vpack.c.bf16 %v71_v19, %v70_v18 }
 0x58f   :  { %878 = vmatmul.mubr.msk.bf16.gmra.mxu0 %vm91_vm5, %v75_v20 }
 0x590   :  { %901 = vmatprep.mubr.msk.bf16.mxu0 %vm1068_vm0, %v1067_v6 }
 0x5f0   :  { %v342_v21 = vpop.permute.xlu1 %341 }
 0x5f1   :  { %902 = vmatmul.mubr.msk.bf16.vlgmr.msra.gmra.mxu0 %vm194_vm6, %v342_v21 }
 0x5f2   :  { %914 = vmatpush3.bf16.msra.mxu0 %v1116_v4  ;;  %917 = vmatprep.mubr.msk.bf16.mxu0 %vm1068_vm0, %v1067_v6 }
 0x5f3   :  { %915 = vmatprep.subr.bf16.mxu0 %v1067_v6 }
 0x5f6   :  { %916 = vmatpush3.bf16.msra.mxu0 %v1126_v7 }
 0x5f7   :  { %929 = vmatprep.subr.bf16.mxu0 %v1067_v6 }
 0x64f   :  { %v1216_v10 = vpop.f32.mrf.mxu0 }
 0x651   :  { %v1218_v22 = vpop.f32.mrf.mxu0 }
 0x652   :  { %v155_v5 = vadd.f32 %v1164_v26, %v1218_v22 }
 0x653   :  { %v1220_v23 = vpop.f32.mrf.mxu0 }
 0x655   :  { %v1222_v24 = vpop.f32.mrf.mxu0 }
 0x6b1   :  { %v380_v28 = vpop.f32.mrf.mxu0 }
 0x6b2   :  { %v386_v29 = vadd.f32 %v380_v28, %v147_v27 }
 0x6b3   :  { %v903_v30 = vpop.f32.mrf.mxu0 }
 0x6b4   :  { %974 = vtanh.f32 %v386_v29  ;;  %v831_v34 = vmul.f32 -1.442695, %v386_v29 }
 0x6b5   :  { %v383_v31 = vpop.f32.mrf.mxu0 }
 0x6b6   :  { %976 = vpow2.f32 %v831_v34 }
 0x6b7   :  { %v904_v32 = vpop.f32.mrf.mxu0 }
 0x6c1   :  { %v975_v33 = vpop.eup %974 }
 0x6c2   :  { %396 = vrot.lane.b32.xlu0 %v975_v33, %s1069_s7  ;;  %v158_v33 = vadd.f32 %v1164_v26, %v1222_v24 }
 0x6c3   :  { %v977_v35 = vpop.eup %976 }
 0x6c4   :  { %v390_v36 = vadd.f32 1.0, %v977_v35 }
 0x6c6   :  { %978 = vrcp.f32 %v390_v36 }
 0x6d3   :  { %v979_v37 = vpop.eup %978 }
 0x6d4   :  { %v394_v25 = vmul.f32 %v979_v37, %v330_v0 }
 0x734   :  { %v397_v38 = vpop.permute.xlu0 %396 }
 0x735   :  { %v399_v39 = vmul.f32 %v979_v37, %v397_v38 }
 0x737   :  { %401 = vrot.lane.b32.xlu1 %v399_v39, %s1070_s8 }
 0x7a9   :  { %v402_v40 = vpop.permute.xlu1 %401 }
 0x7aa   :  { %v404_v41 = vadd.f32 %v402_v40, %v394_v25 }
 0x7ac   :  { %980 = vtanh.f32 %v404_v41 }
 0x7b9   :  { %v981_v42 = vpop.eup %980 }
 0x7ba   :  { %407 = vrot.lane.b32.xlu0 %v981_v42, %s1069_s7 }
 0x82c   :  { %v408_v43 = vpop.permute.xlu0 %407 }
 0x82d   :  { %v410_v44 = vmul.f32 %v979_v37, %v408_v43 }
 0x82f   :  { %v413_v46 = vpack.c.bf16 %v410_v44, %v410_v44 }
 0x831   :  { %415 = vrot.lane.b32.xlu1 %v413_v46, %s1070_s8 }
 0x8a3   :  { %v416_v47 = vpop.permute.xlu1 %415 }
 0x8a4   :  { %910 = vmatmul.mubr.msk.bf16.vlgmr.msra.gmra.mxu1 %vm194_vm6, %v416_v47 }
 0x8a5   :  { %922 = vmatpush3.bf16.msra.mxu1 %v1116_v4  ;;  %925 = vmatprep.mubr.msk.bf16.mxu1 %vm1068_vm0, %v1067_v6 }
 0x8a6   :  { %923 = vmatprep.subr.bf16.mxu1 %v1067_v6 }
 0x8a9   :  { %924 = vmatpush3.bf16.msra.mxu1 %v1126_v7 }
 0x8aa   :  { %937 = vmatprep.subr.bf16.mxu1 %v1067_v6 }
 0x964   :  { %v454_v49 = vpop.f32.mrf.mxu1 }
 0x965   :  { %v460_v50 = vadd.f32 %v454_v49, %v150_v48 }
 0x966   :  { %v911_v51 = vpop.f32.mrf.mxu1 }
 0x967   :  { %982 = vtanh.f32 %v460_v50  ;;  %v833_v55 = vmul.f32 -1.442695, %v460_v50  ;;  %v163_v50 = vadd.f32 %v1216_v10, %v1164_v26 }
 0x968   :  { %v457_v52 = vpop.f32.mrf.mxu1 }
 0x969   :  { %984 = vpow2.f32 %v833_v55 }
 0x96a   :  { %v912_v53 = vpop.f32.mrf.mxu1 }
 0x974   :  { %v983_v54 = vpop.eup %982 }
 0x975   :  { %470 = vrot.lane.b32.xlu0 %v983_v54, %s1069_s7 }
 0x976   :  { %v985_v56 = vpop.eup %984 }
 0x977   :  { %v464_v57 = vadd.f32 1.0, %v985_v56 }
 0x979   :  { %986 = vrcp.f32 %v464_v57 }
 0x986   :  { %v987_v58 = vpop.eup %986 }
 0x987   :  { %v468_v45 = vmul.f32 %v987_v58, %v404_v41 }
 0x9e7   :  { %v471_v59 = vpop.permute.xlu0 %470 }
 0x9e8   :  { %v473_v60 = vmul.f32 %v987_v58, %v471_v59 }
 0x9ea   :  { %475 = vrot.lane.b32.xlu1 %v473_v60, %s1070_s8 }
 0xa5c   :  { %v476_v61 = vpop.permute.xlu1 %475 }
 0xa5d   :  { %v478_v62 = vadd.f32 %v476_v61, %v468_v45 }
 0xa5f   :  { %988 = vtanh.f32 %v478_v62 }
 0xa6c   :  { %v989_v63 = vpop.eup %988 }
 0xa6d   :  { %481 = vrot.lane.b32.xlu0 %v989_v63, %s1069_s7 }
 0xadf   :  { %v482_v0 = vpop.permute.xlu0 %481 }
 0xae0   :  { %v484_v1 = vmul.f32 %v987_v58, %v482_v0 }
 0xae2   :  { %v487_v2 = vpack.c.bf16 %v484_v1, %v484_v1 }
 0xae4   :  { %489 = vrot.lane.b32.xlu1 %v487_v2, %s1070_s8 }
 0xb56   :  { %v490_v3 = vpop.permute.xlu1 %489 }
 0xb57   :  { %918 = vmatmul.mubr.msk.bf16.vlgmr.msra.gmra.mxu0 %vm194_vm6, %v490_v3 }
 0xb58   :  { %930 = vmatpush3.bf16.msra.mxu0 %v1116_v4  ;;  %933 = vmatprep.mubr.msk.bf16.mxu0 %vm1068_vm0, %v1067_v6 }
 0xb59   :  { %931 = vmatprep.subr.bf16.mxu0 %v1067_v6 }
 0xb5c   :  { %932 = vmatpush3.bf16.msra.mxu0 %v1126_v7 }
 0xc17   :  { %v528_v8 = vpop.f32.mrf.mxu0 }
 0xc18   :  { %v534_v9 = vadd.f32 %v528_v8, %v155_v5  ;;  %v166_v8 = vadd.f32 %v1220_v23, %v1164_v26 }
 0xc19   :  { %v919_v11 = vpop.f32.mrf.mxu0 }
 0xc1a   :  { %990 = vtanh.f32 %v534_v9  ;;  %v835_v15 = vmul.f32 -1.442695, %v534_v9 }
 0xc1b   :  { %v531_v12 = vpop.f32.mrf.mxu0 }
 0xc1c   :  { %992 = vpow2.f32 %v835_v15 }
 0xc1d   :  { %v920_v13 = vpop.f32.mrf.mxu0 }
 0xc27   :  { %v991_v14 = vpop.eup %990 }
 0xc28   :  { %544 = vrot.lane.b32.xlu0 %v991_v14, %s1069_s7 }
 0xc29   :  { %v993_v16 = vpop.eup %992 }
 0xc2a   :  { %v538_v17 = vadd.f32 1.0, %v993_v16 }
 0xc2c   :  { %994 = vrcp.f32 %v538_v17 }
 0xc39   :  { %v995_v18 = vpop.eup %994 }
 0xc3a   :  { %v542_v21 = vmul.f32 %v995_v18, %v478_v62 }
 0xc9a   :  { %v545_v19 = vpop.permute.xlu0 %544 }
 0xc9b   :  { %v547_v20 = vmul.f32 %v995_v18, %v545_v19 }
 0xc9d   :  { %549 = vrot.lane.b32.xlu1 %v547_v20, %s1070_s8 }
 0xd0f   :  { %v550_v22 = vpop.permute.xlu1 %549 }
 0xd10   :  { %v552_v27 = vadd.f32 %v550_v22, %v542_v21 }
 0xd12   :  { %996 = vtanh.f32 %v552_v27 }
 0xd1f   :  { %v997_v28 = vpop.eup %996 }
 0xd20   :  { %555 = vrot.lane.b32.xlu0 %v997_v28, %s1069_s7 }
 0xd92   :  { %v556_v29 = vpop.permute.xlu0 %555 }
 0xd93   :  { %v558_v30 = vmul.f32 %v995_v18, %v556_v29 }
 0xd95   :  { %v561_v31 = vpack.c.bf16 %v558_v30, %v558_v30 }
 0xd97   :  { %563 = vrot.lane.b32.xlu1 %v561_v31, %s1070_s8 }
 0xe09   :  { %v564_v32 = vpop.permute.xlu1 %563 }
 0xe0a   :  { %926 = vmatmul.mubr.msk.bf16.vlgmr.msra.gmra.mxu1 %vm194_vm6, %v564_v32 }
 0xe0b   :  { %938 = vmatpush3.bf16.msra.mxu1 %v1116_v4  ;;  %941 = vmatprep.mubr.msk.bf16.mxu1 %vm1068_vm0, %v1067_v6 }
 0xe0c   :  { %939 = vmatprep.subr.bf16.mxu1 %v1067_v6 }
 0xe0f   :  { %940 = vmatpush3.bf16.msra.mxu1 %v1126_v7 }
 0xeca   :  { %v602_v34 = vpop.f32.mrf.mxu1 }
 0xecb   :  { %v608_v35 = vadd.f32 %v602_v34, %v158_v33 }
 0xecc   :  { %v927_v36 = vpop.f32.mrf.mxu1 }
 0xecd   :  { %998 = vtanh.f32 %v608_v35  ;;  %v837_v4 = vmul.f32 -1.442695, %v608_v35 }
 0xece   :  { %v605_v37 = vpop.f32.mrf.mxu1 }
 0xecf   :  { %1000 = vpow2.f32 %v837_v4 }
 0xed0   :  { %v928_v38 = vpop.f32.mrf.mxu1 }
 0xeda   :  { %v999_v39 = vpop.eup %998 }
 0xedb   :  { %618 = vrot.lane.b32.xlu0 %v999_v39, %s1069_s7 }
 0xedc   :  { %v1001_v25 = vpop.eup %1000 }
 0xedd   :  { %v612_v40 = vadd.f32 1.0, %v1001_v25 }
 0xedf   :  { %1002 = vrcp.f32 %v612_v40 }
 0xeec   :  { %v1003_v6 = vpop.eup %1002 }
 0xeed   :  { %v616_v24 = vmul.f32 %v1003_v6, %v552_v27 }
 0xf4d   :  { %v619_v41 = vpop.permute.xlu0 %618 }
 0xf4e   :  { %v621_v7 = vmul.f32 %v1003_v6, %v619_v41 }
 0xf50   :  { %623 = vrot.lane.b32.xlu1 %v621_v7, %s1070_s8 }
 0xfc2   :  { %v624_v42 = vpop.permute.xlu1 %623 }
 0xfc3   :  { %v626_v43 = vadd.f32 %v624_v42, %v616_v24 }
 0xfc5   :  { %1004 = vtanh.f32 %v626_v43 }
 0xfd2   :  { %v1005_v44 = vpop.eup %1004 }
 0xfd3   :  { %629 = vrot.lane.b32.xlu0 %v1005_v44, %s1069_s7 }
0x1045   :  { %v630_v46 = vpop.permute.xlu0 %629 }
0x1046   :  { %v632_v47 = vmul.f32 %v1003_v6, %v630_v46 }
0x1048   :  { %v635_v48 = vpack.c.bf16 %v632_v47, %v632_v47 }
0x104a   :  { %637 = vrot.lane.b32.xlu1 %v635_v48, %s1070_s8 }
0x10bc   :  { %v638_v49 = vpop.permute.xlu1 %637 }
0x10bd   :  { %934 = vmatmul.mubr.msk.bf16.vlgmr.msra.gmra.mxu0 %vm194_vm6, %v638_v49 }
0x117d   :  { %v676_v51 = vpop.f32.mrf.mxu0 }
0x117e   :  { %v682_v52 = vadd.f32 %v676_v51, %v163_v50 }
0x117f   :  { %v935_v53 = vpop.f32.mrf.mxu0 }
0x1180   :  { %1006 = vtanh.f32 %v682_v52  ;;  %v839_v57 = vmul.f32 -1.442695, %v682_v52 }
0x1181   :  { %v679_v54 = vpop.f32.mrf.mxu0 }
0x1182   :  { %1008 = vpow2.f32 %v839_v57 }
0x1183   :  { %v936_v55 = vpop.f32.mrf.mxu0 }
0x118d   :  { %v1007_v56 = vpop.eup %1006 }
0x118e   :  { %692 = vrot.lane.b32.xlu0 %v1007_v56, %s1069_s7 }
0x118f   :  { %v1009_v58 = vpop.eup %1008 }
0x1190   :  { %v686_v59 = vadd.f32 1.0, %v1009_v58 }
0x1192   :  { %1010 = vrcp.f32 %v686_v59 }
0x119f   :  { %v1011_v60 = vpop.eup %1010 }
0x11a0   :  { %v690_v10 = vmul.f32 %v1011_v60, %v626_v43 }
0x1200   :  { %v693_v45 = vpop.permute.xlu0 %692 }
0x1201   :  { %v695_v61 = vmul.f32 %v1011_v60, %v693_v45 }
0x1203   :  { %697 = vrot.lane.b32.xlu1 %v695_v61, %s1070_s8 }
0x1275   :  { %v698_v62 = vpop.permute.xlu1 %697 }
0x1276   :  { %v700_v63 = vadd.f32 %v698_v62, %v690_v10 }
0x1278   :  { %1012 = vtanh.f32 %v700_v63 }
0x1285   :  { %v1013_v0 = vpop.eup %1012 }
0x1286   :  { %703 = vrot.lane.b32.xlu0 %v1013_v0, %s1069_s7 }
0x12f8   :  { %v704_v1 = vpop.permute.xlu0 %703 }
0x12f9   :  { %v706_v2 = vmul.f32 %v1011_v60, %v704_v1 }
0x12fb   :  { %v709_v3 = vpack.c.bf16 %v706_v2, %v706_v2 }
0x12fd   :  { %711 = vrot.lane.b32.xlu1 %v709_v3, %s1070_s8 }
0x136f   :  { %v712_v5 = vpop.permute.xlu1 %711 }
0x1370   :  { %942 = vmatmul.mubr.msk.bf16.vlgmr.msra.gmra.mxu1 %vm194_vm6, %v712_v5 }
0x1430   :  { %v750_v9 = vpop.f32.mrf.mxu1 }
0x1431   :  { %v756_v11 = vadd.f32 %v750_v9, %v166_v8 }
0x1432   :  { %v943_v12 = vpop.f32.mrf.mxu1 }
0x1433   :  { %1014 = vtanh.f32 %v756_v11  ;;  %v841_v16 = vmul.f32 -1.442695, %v756_v11 }
0x1434   :  { %v753_v13 = vpop.f32.mrf.mxu1 }
0x1435   :  { %1016 = vpow2.f32 %v841_v16 }
0x1436   :  { %v944_v14 = vpop.f32.mrf.mxu1 }
0x1440   :  { %v1015_v15 = vpop.eup %1014 }
0x1441   :  { %766 = vrot.lane.b32.xlu0 %v1015_v15, %s1069_s7 }
0x1442   :  { %v1017_v17 = vpop.eup %1016 }
0x1443   :  { %v760_v18 = vadd.f32 1.0, %v1017_v17 }
0x1445   :  { %1018 = vrcp.f32 %v760_v18 }
0x1452   :  { %v1019_v19 = vpop.eup %1018 }
0x1453   :  { %v764_v26 = vmul.f32 %v1019_v19, %v700_v63 }
0x14b3   :  { %v767_v20 = vpop.permute.xlu0 %766 }
0x14b4   :  { %v769_v21 = vmul.f32 %v1019_v19, %v767_v20 }
0x14b6   :  { %771 = vrot.lane.b32.xlu1 %v769_v21, %s1070_s8 }
0x1528   :  { %v772_v23 = vpop.permute.xlu1 %771 }
0x1529   :  { %v774_v22 = vadd.f32 %v772_v23, %v764_v26 }
0x152b   :  { %1020 = vtanh.f32 %v774_v22 }
0x1538   :  { %v1021_v27 = vpop.eup %1020 }
0x1539   :  { %777 = vrot.lane.b32.xlu0 %v1021_v27, %s1069_s7 }
0x153d   :  { %787 = vrot.lane.b32.xlu0 %v774_v22, %s1071_s0 }
0x15ab   :  { %v778_v28 = vpop.permute.xlu0 %777 }
0x15ac   :  { %v780_v29 = vmul.f32 %v1019_v19, %v778_v28 }
0x15ae   :  { %782 = vrot.lane.b32.xlu1 %v780_v29, %s1070_s8 }
0x15af   :  { %v788_v30 = vpop.permute.xlu0 %787 }
0x15b0   :  { %790 = vst.msk [vmem:[#allocation5] sm:$0xff] %vm194_vm6, %v788_v30 }
0x15b1   :  { %1033 = shalt.err (!%p1030_p4)
}
0x15b2   :  { %810 = dma.vmem_to_hbm [thread:$0]  %s808_s17, 128, %s1294_s5, [#allocation6]  }
0x15b3   :  { %s1073_s21 = smov [#allocation3]  }
0x15b4   :  { %s797_s22 = sshll.u32 %s1073_s21, 4  ;;  %s798_s22 = int_to_ptr.vmem [resolvable:$true] %s797_s22 }
0x15b5   :  { %s1042_s23 = scalar_lea.vmem %s798_s22, 128  ;;  %p1047_p6 = scmp.lt.s32.totalorder %s798_s22, %s798_s22 }
0x15b6   :  { %p1043_p5 = scmp.ne.s32.totalorder %s798_s22, %s1042_s23  ;;  %p1048_p7 = scmp.lt.s32.totalorder %s1042_s23, %s1042_s23 }
0x15b8   :  { %p1049_p8 = por %p1048_p7, %p1047_p6 }
0x15ba   :  { %p1050_p9 = pnand %p1049_p8, %p1043_p5 }
0x1620   :  { %v783_v31 = vpop.permute.xlu1 %782 }
0x1621   :  { %785 = vst.msk [vmem:[#allocation3] sm:$0xff] %vm194_vm6, %v783_v31 }
0x1622   :  { %1053 = shalt.err (!%p1050_p9)
}
0x1623   :  { %800 = dma.vmem_to_hbm [thread:$0]  %s798_s22, 128, %s1293_s4, [#allocation4]  }
0x1624   :  { %1062 = dma.done.wait [#allocation4], 128  }
0x1625   :  { %1063 = vsyncadd [#allocation4], 4294967168 }
0x1626   :  { %1064 = dma.done.wait [#allocation6], 128  }
0x1627   :  { %1065 = vsyncadd [#allocation6], 4294967168 }
0x1628   :  { %817 = vsyncpa [#allocation4], 1 }
0x1629   :  { %818 = vsyncpa [#allocation6], 1 }

</bundles_post_ra>
